<compile_context>
chip_gen: v5e
topology: v5e:2x2
jax: 0.10.0
libtpu: 0.0.40
codegen_flags: <defaults>
</compile_context>

<pallas_src>
import math

import jax
import jax.numpy as jnp
from jax import lax
from jax.experimental import pallas as pl
from jax.experimental.pallas import tpu as pltpu

# ---------------- Configuration (small synthetic shapes) ----------------
NUM_IMAGES = 2
IMG_H, IMG_W = 32, 32
FEAT_H, FEAT_W = 16, 16
C_FEAT = 8                  # backbone feature channels (torch: 256)
NUM_PROPOSALS = 8           # proposals per image from the RPN
BOX_POOL = 7                # box_roi_pool output size
MASK_POOL = 14              # mask_roi_pool output size
REPR_SIZE = 32              # TwoMLPHead representation size (torch: 1024)
NUM_CLASSES = 5             # including background class 0
NUM_MASK_LAYERS = 4         # MaskRCNNHeads conv layers
C_MASK = 8                  # mask head hidden channels (torch: 256)
MASK_OUT = 28               # mask predictor output (after 2x deconv)

SCORE_THRESH = 0.05
NMS_THRESH = 0.5
DET_PER_IMG = 4
BBOX_REG_WEIGHTS = (10.0, 10.0, 5.0, 5.0)
BBOX_XFORM_CLIP = math.log(1000.0 / 16.0)
SPATIAL_SCALE = FEAT_H / IMG_H

FLAT_BOX_FEAT = C_FEAT * BOX_POOL * BOX_POOL          # 392
BOX_OUT_LANES = 128                                   # lane-dense box-head slab
R_MASK = 4                                            # RoIs per mask grid step
MROWS = R_MASK * MASK_POOL                            # 56 sublane rows / step
MLANES = MASK_POOL * C_MASK                           # 112 dense lanes (x, c)
DEC_LANES = MASK_POOL * 4 * C_MASK                    # 448 lanes (x, tap, c)
LOGIT_LANES = MASK_POOL * 4 * NUM_CLASSES             # 280 lanes (x, tap, k)
MASK_OUT_LANES = ((LOGIT_LANES + 127) // 128) * 128   # 384 lane-dense output
NEG = -1e30

assert 5 * NUM_CLASSES <= BOX_OUT_LANES
assert LOGIT_LANES <= MASK_OUT_LANES


def _round_up(v, m):
    return ((v + m - 1) // m) * m


# ======================================================================
# Pallas kernel 1: box_head (TwoMLPHead) + box_predictor (FastRCNNPredictor)
#                  + softmax + BoxCoder.decode + clip_boxes_to_image
# ======================================================================
def _box_head_kernel(feat_ref, prop_ref, w6_ref, b6_ref, w7_ref, b7_ref,
                     wp_ref, bp_ref, out_ref):
    x = feat_ref[...].astype(jnp.bfloat16)
    h = jnp.maximum(
        jnp.dot(x, w6_ref[...], preferred_element_type=jnp.float32)
        + b6_ref[...], 0.0)
    h = jnp.maximum(
        jnp.dot(h.astype(jnp.bfloat16), w7_ref[...],
                preferred_element_type=jnp.float32) + b7_ref[...], 0.0)
    # fused (cls | dx | dy | dw | dh) predictor, coord-major box columns,
    # 1/bbox_reg_weights already folded into wp/bp in the wrapper.
    pred = jnp.dot(h.astype(jnp.bfloat16), wp_ref[...],
                   preferred_element_type=jnp.float32) + bp_ref[...]

    K = NUM_CLASSES
    logits = pred[:, 0:K]
    dx = pred[:, K:2 * K]
    dy = pred[:, 2 * K:3 * K]
    dw = pred[:, 3 * K:4 * K]
    dh = pred[:, 4 * K:5 * K]

    # exact softmax divide (keeps parity with torch near SCORE_THRESH/NMS ties)
    m = jnp.max(logits, axis=-1, keepdims=True)
    e = jnp.exp(logits - m)
    scores = e / jnp.sum(e, axis=-1, keepdims=True)

    # BoxCoder(10,10,5,5).decode + clip_boxes_to_image, vectorized over classes
    p = prop_ref[...]
    widths = p[:, 2:3] - p[:, 0:1]
    heights = p[:, 3:4] - p[:, 1:2]
    ctr_x = p[:, 0:1] + 0.5 * widths
    ctr_y = p[:, 1:2] + 0.5 * heights
    pcx = dx * widths + ctr_x
    pcy = dy * heights + ctr_y
    pw = jnp.exp(jnp.minimum(dw, BBOX_XFORM_CLIP)) * widths
    ph = jnp.exp(jnp.minimum(dh, BBOX_XFORM_CLIP)) * heights
    x1 = jnp.clip(pcx - 0.5 * pw, 0.0, float(IMG_W))
    y1 = jnp.clip(pcy - 0.5 * ph, 0.0, float(IMG_H))
    x2 = jnp.clip(pcx + 0.5 * pw, 0.0, float(IMG_W))
    y2 = jnp.clip(pcy + 0.5 * ph, 0.0, float(IMG_H))
    pad = jnp.zeros((x1.shape[0], BOX_OUT_LANES - 5 * K), jnp.float32)
    # one lane-dense (TN, 128) store: [scores(K)|x1|y1|x2|y2|zeros]
    out_ref[...] = jnp.concatenate([scores, x1, y1, x2, y2, pad], axis=1)


def box_head_predict(box_feat_flat, proposals_cat, bparams):
    n = box_feat_flat.shape[0]
    # pad only to 8 sublanes (not 128) and split into >=2 grid steps when
    # possible so the v7x second TensorCore gets work (no-op on v5e/v6e).
    n_pad8 = _round_up(max(n, 1), 8)
    tn = min(128, max(8, _round_up(n_pad8 // 2, 8)))
    n_pad = _round_up(max(n, 1), tn)
    # TODO(synk): at real Mask R-CNN sizes (FC1 = 12544x1024) feed feat as bf16,
    # use TN=256 on v6e/v7x, and on v7x K-tile the fc6 matmul with an f32 VMEM
    # accumulator + single-buffered weights (Buffered(1)) to fit 64 MiB VMEM;
    # weights stay fully resident on v5e/v6e's 128 MiB.
    feat = jnp.pad(box_feat_flat, ((0, n_pad - n), (0, 0)))
    props = jnp.pad(proposals_cat, ((0, n_pad - n), (0, 0)))

    bf16 = jnp.bfloat16
    w6 = bparams["w6"].astype(bf16)
    w7 = bparams["w7"].astype(bf16)
    # fuse cls + box predictors; fold 1/bbox_reg_weights and reorder the box
    # columns class-major -> coord-major [x1(K)|y1(K)|x2(K)|y2(K)].
    wx, wy, ww, wh = BBOX_REG_WEIGHTS
    inv_w = jnp.array([1.0 / wx, 1.0 / wy, 1.0 / ww, 1.0 / wh], jnp.float32)
    wbox_cm = (bparams["wbox"].reshape(REPR_SIZE, NUM_CLASSES, 4) * inv_w)
    wbox_cm = wbox_cm.transpose(0, 2, 1).reshape(REPR_SIZE, 4 * NUM_CLASSES)
    bbox_cm = (bparams["bbox"].reshape(1, NUM_CLASSES, 4) * inv_w)
    bbox_cm = bbox_cm.transpose(0, 2, 1).reshape(1, 4 * NUM_CLASSES)
    wp = jnp.concatenate([bparams["wcls"], wbox_cm], axis=1).astype(bf16)
    bp = jnp.concatenate([bparams["bcls"], bbox_cm], axis=1)          # f32

    in_specs = [
        pl.BlockSpec((tn, FLAT_BOX_FEAT), lambda i: (i, 0)),
        pl.BlockSpec((tn, 4), lambda i: (i, 0)),
        pl.BlockSpec((FLAT_BOX_FEAT, REPR_SIZE), lambda i: (0, 0)),
        pl.BlockSpec((1, REPR_SIZE), lambda i: (0, 0)),
        pl.BlockSpec((REPR_SIZE, REPR_SIZE), lambda i: (0, 0)),
        pl.BlockSpec((1, REPR_SIZE), lambda i: (0, 0)),
        pl.BlockSpec((REPR_SIZE, 5 * NUM_CLASSES), lambda i: (0, 0)),
        pl.BlockSpec((1, 5 * NUM_CLASSES), lambda i: (0, 0)),
    ]
    out_spec = pl.BlockSpec((tn, BOX_OUT_LANES), lambda i: (i, 0))
    out = pl.pallas_call(
        _box_head_kernel,
        out_shape=jax.ShapeDtypeStruct((n_pad, BOX_OUT_LANES), jnp.float32),
        grid_spec=pltpu.PrefetchScalarGridSpec(
            num_scalar_prefetch=0, grid=(n_pad // tn,),
            in_specs=in_specs, out_specs=out_spec),
        compiler_params=pltpu.CompilerParams(dimension_semantics=("parallel",)),
    )(feat, props, w6, bparams["b6"], w7, bparams["b7"], wp, bp)

    scores = out[:n, :NUM_CLASSES]
    boxes_cm = out[:n, NUM_CLASSES:5 * NUM_CLASSES]
    pred_boxes = boxes_cm.reshape(n, 4, NUM_CLASSES).transpose(0, 2, 1)
    return scores, pred_boxes


# ======================================================================
# Pallas kernel 2: mask_head (4x conv3x3+ReLU) + mask_predictor
#                  (ConvTranspose2d(2,2,stride2)+ReLU + Conv2d 1x1)
# ======================================================================
def _mask_head_kernel(x_ref, tm_ref, wc_ref, bc_ref, wd_ref, bd_ref,
                      wl_ref, bl_ref, out_ref):
    # Layout: rows = roi*14 + y, lanes = x*C_MASK + c (dense 112 lanes).
    # dx taps are folded into banded (112,112) weights (x zero-padding comes
    # from the band structure); dy taps are +/-1 sublane rolls.  NOTE: the
    # circular roll crosses RoI boundaries inside the tile and wraps at the
    # tile edges -- every such row is y==0 (up) or y==13 (down) and is zeroed
    # by the precomputed row masks, so the wrap never leaks data.
    cur = x_ref[...]                       # (MROWS, MLANES) f32
    tm_up = tm_ref[0]                      # 0 where y == 0            (dy=-1)
    tm_dn = tm_ref[1]                      # 0 where y == MASK_POOL-1  (dy=+1)
    for layer in range(NUM_MASK_LAYERS):
        up = pltpu.roll(cur, shift=1, axis=0) * tm_up              # row y-1
        dn = pltpu.roll(cur, shift=MROWS - 1, axis=0) * tm_dn      # row y+1
        acc = jnp.dot(up.astype(jnp.bfloat16), wc_ref[3 * layer + 0],
                      preferred_element_type=jnp.float32)
        acc = acc + jnp.dot(cur.astype(jnp.bfloat16), wc_ref[3 * layer + 1],
                            preferred_element_type=jnp.float32)
        acc = acc + jnp.dot(dn.astype(jnp.bfloat16), wc_ref[3 * layer + 2],
                            preferred_element_type=jnp.float32)
        cur = jnp.maximum(acc + bc_ref[layer], 0.0)
    # fused 2x2 stride-2 deconv (4 taps in one matmul) + ReLU, then the
    # block-diagonal 1x1 logits matmul; one lane-dense 384-wide store.
    d = jnp.maximum(
        jnp.dot(cur.astype(jnp.bfloat16), wd_ref[...],
                preferred_element_type=jnp.float32) + bd_ref[...], 0.0)
    out_ref[...] = jnp.dot(d.astype(jnp.bfloat16), wl_ref[...],
                           preferred_element_type=jnp.float32) + bl_ref[...]


def _mask_row_masks():
    y = jnp.tile(jnp.arange(MASK_POOL), R_MASK)               # (MROWS,)
    up_ok = (y >= 1).astype(jnp.float32)
    dn_ok = (y <= MASK_POOL - 2).astype(jnp.float32)
    m = jnp.stack([up_ok, dn_ok], axis=0)                     # (2, MROWS)
    return jnp.broadcast_to(m[:, :, None], (2, MROWS, MLANES))


def mask_head_predict(mask_feat_nhwc, mparams):
    n = mask_feat_nhwc.shape[0]
    n_pad = _round_up(max(n, 1), R_MASK)
    # rows = (roi, y); lanes = (x, c)
    x = mask_feat_nhwc.reshape(n * MASK_POOL, MLANES)
    x = jnp.pad(x, ((0, (n_pad - n) * MASK_POOL), (0, 0)))
    tmask = _mask_row_masks()

    bf16 = jnp.bfloat16
    L = NUM_MASK_LAYERS
    # conv3x3 -> per (layer, ky) banded weight over x:
    #   W[l,ky](xi*C+ci, xo*C+co) = wc[l, ky, xi-xo+1, ci, co] if |xi-xo| <= 1
    wc5 = mparams["wc"].reshape(L, 3, 3, C_MASK, C_MASK)      # (l, ky, kx, ci, co)
    xi = jnp.arange(MASK_POOL)
    sel = ((xi[None, :, None] - xi[None, None, :])
           == (jnp.arange(3)[:, None, None] - 1)).astype(jnp.float32)  # (kx,xi,xo)
    wc_big = jnp.einsum("uxy,lkuio->lkxiyo", sel, wc5)
    wc_big = wc_big.reshape(L * 3, MLANES, MLANES).astype(bf16)
    bc_big = jnp.tile(mparams["bc"], (1, 1, MASK_POOL))               # (L,1,112)
    # deconv 2x2 s2: block-diagonal over x, taps concatenated in lanes
    wd_big = jnp.einsum("xy,tio->xiyto",
                        jnp.eye(MASK_POOL, dtype=jnp.float32), mparams["wd"])
    wd_big = wd_big.reshape(MLANES, DEC_LANES).astype(bf16)           # (112,448)
    bd_big = jnp.tile(mparams["bd"], (1, MASK_POOL * 4))              # (1,448)
    # 1x1 logits conv: block-diagonal over (x, tap), zero-padded to 384 lanes
    wl_big = jnp.einsum("xy,ts,ik->xtiysk",
                        jnp.eye(MASK_POOL, dtype=jnp.float32),
                        jnp.eye(4, dtype=jnp.float32), mparams["wl"])
    wl_big = wl_big.reshape(DEC_LANES, LOGIT_LANES)
    wl_big = jnp.pad(wl_big, ((0, 0), (0, MASK_OUT_LANES - LOGIT_LANES)))
    wl_big = wl_big.astype(bf16)
    bl_big = jnp.pad(jnp.tile(mparams["bl"], (1, MASK_POOL * 4)),
                     ((0, 0), (0, MASK_OUT_LANES - LOGIT_LANES)))
    # TODO(synk): at real sizes (C=256, K=91) replace the block-diagonal
    # deconv/logits weights with per-tap dense matmuls and K-tile the conv
    # accumulation to avoid streaming structural zeros through the MXU.

    in_specs = [
        pl.BlockSpec((MROWS, MLANES), lambda r: (r, 0)),
        pl.BlockSpec((2, MROWS, MLANES), lambda r: (0, 0, 0)),
        pl.BlockSpec((L * 3, MLANES, MLANES), lambda r: (0, 0, 0)),
        pl.BlockSpec((L, 1, MLANES), lambda r: (0, 0, 0)),
        pl.BlockSpec((MLANES, DEC_LANES), lambda r: (0, 0)),
        pl.BlockSpec((1, DEC_LANES), lambda r: (0, 0)),
        pl.BlockSpec((DEC_LANES, MASK_OUT_LANES), lambda r: (0, 0)),
        pl.BlockSpec((1, MASK_OUT_LANES), lambda r: (0, 0)),
    ]
    out_spec = pl.BlockSpec((MROWS, MASK_OUT_LANES), lambda r: (r, 0))
    out = pl.pallas_call(
        _mask_head_kernel,
        out_shape=jax.ShapeDtypeStruct(
            (n_pad * MASK_POOL, MASK_OUT_LANES), jnp.float32),
        grid_spec=pltpu.PrefetchScalarGridSpec(
            num_scalar_prefetch=0, grid=(n_pad // R_MASK,),
            in_specs=in_specs, out_specs=out_spec),
        compiler_params=pltpu.CompilerParams(dimension_semantics=("parallel",)),
    )(x, tmask, wc_big, bc_big, wd_big, bd_big, wl_big, bl_big)

    # lanes = x*(4K) + (di*2+dj)*K + k  ->  (n, K, 2y+di, 2x+dj)
    logit = out[:n * MASK_POOL, :LOGIT_LANES]
    logit = logit.reshape(n, MASK_POOL, MASK_POOL, 2, 2, NUM_CLASSES)
    logit = logit.transpose(0, 5, 1, 3, 2, 4)
    return logit.reshape(n, NUM_CLASSES, MASK_OUT, MASK_OUT)


# ======================================================================
# Plain-JAX glue: RoIAlign, NMS / detection postprocess, mask selection
# ======================================================================
def roi_align(feat_chw, boxes, out_size, spatial_scale):
    # TODO(synk): approximates torchvision MultiScaleRoIAlign (sampling_ratio=1,
    # aligned=False, clamped bilinear); data-dependent gather kept in plain JAX.
    C, H, W = feat_chw.shape

    def one(box):
        b = box * spatial_scale
        x1, y1, x2, y2 = b[0], b[1], b[2], b[3]
        roi_w = jnp.maximum(x2 - x1, 1.0)
        roi_h = jnp.maximum(y2 - y1, 1.0)
        bw = roi_w / out_size
        bh = roi_h / out_size
        xs = x1 + (jnp.arange(out_size, dtype=jnp.float32) + 0.5) * bw
        ys = y1 + (jnp.arange(out_size, dtype=jnp.float32) + 0.5) * bh
        yg = jnp.broadcast_to(ys[:, None], (out_size, out_size))
        xg = jnp.broadcast_to(xs[None, :], (out_size, out_size))
        y0 = jnp.floor(yg)
        x0 = jnp.floor(xg)
        ly = yg - y0
        lx = xg - x0
        y0i = jnp.clip(y0.astype(jnp.int32), 0, H - 1)
        y1i = jnp.clip(y0i + 1, 0, H - 1)
        x0i = jnp.clip(x0.astype(jnp.int32), 0, W - 1)
        x1i = jnp.clip(x0i + 1, 0, W - 1)
        v00 = feat_chw[:, y0i, x0i]
        v01 = feat_chw[:, y0i, x1i]
        v10 = feat_chw[:, y1i, x0i]
        v11 = feat_chw[:, y1i, x1i]
        return ((1 - ly) * (1 - lx) * v00 + (1 - ly) * lx * v01 +
                ly * (1 - lx) * v10 + ly * lx * v11)

    return jax.vmap(one)(boxes)           # (M, C, out, out)


def _iou_one_vs_all(box, boxes):
    x1 = jnp.maximum(box[0], boxes[:, 0])
    y1 = jnp.maximum(box[1], boxes[:, 1])
    x2 = jnp.minimum(box[2], boxes[:, 2])
    y2 = jnp.minimum(box[3], boxes[:, 3])
    inter = jnp.maximum(x2 - x1, 0.0) * jnp.maximum(y2 - y1, 0.0)
    a = (box[2] - box[0]) * (box[3] - box[1])
    b = (boxes[:, 2] - boxes[:, 0]) * (boxes[:, 3] - boxes[:, 1])
    return inter / jnp.maximum(a + b - inter, 1e-6)


def _greedy_nms(boxes, scores, iou_thresh, max_out):
    # TODO(synk): sequential, data-dependent NMS has no clean Pallas equivalent;
    # fixed-iteration greedy NMS in plain JAX with a validity mask.
    n = boxes.shape[0]

    def body(i, carry):
        scr, sel, selv = carry
        j = jnp.argmax(scr)
        val = scr[j] > NEG / 2
        sel = sel.at[i].set(j.astype(jnp.int32))
        selv = selv.at[i].set(val)
        ious = _iou_one_vs_all(boxes[j], boxes)
        suppress = (ious > iou_thresh) | (jnp.arange(n) == j)
        scr = jnp.where(val & suppress, NEG, scr)
        return scr, sel, selv

    init = (scores, jnp.zeros((max_out,), jnp.int32), jnp.zeros((max_out,), bool))
    _, sel, selv = lax.fori_loop(0, max_out, body, init)
    return sel, selv


def postprocess_detections_one_image(pred_boxes, pred_scores):
    # pred_boxes: (P, K, 4) decoded + clipped; pred_scores: (P, K) softmaxed
    P, K = pred_scores.shape
    boxes = pred_boxes[:, 1:, :].reshape(-1, 4)      # drop background column
    scores = pred_scores[:, 1:].reshape(-1)
    labels = jnp.broadcast_to(
        jnp.arange(1, K, dtype=jnp.int32)[None, :], (P, K - 1)).reshape(-1)
    ws = boxes[:, 2] - boxes[:, 0]
    hs = boxes[:, 3] - boxes[:, 1]
    valid = (scores > SCORE_THRESH) & (ws >= 0.01) & (hs >= 0.01)
    masked_scores = jnp.where(valid, scores, NEG)
    # batched_nms: offset boxes per label so classes never suppress each other
    offs = labels.astype(jnp.float32) * (IMG_W + IMG_H + 1.0)
    sel, selv = _greedy_nms(boxes + offs[:, None], masked_scores,
                            NMS_THRESH, DET_PER_IMG)
    out_boxes = boxes[sel] * selv[:, None].astype(jnp.float32)
    out_scores = jnp.where(selv, scores[sel], 0.0)
    out_labels = jnp.where(selv, labels[sel], 0)
    return out_boxes, out_scores, out_labels, selv


def roi_heads_forward(features, proposals, image_shapes, params):
    del image_shapes  # all images are IMG_H x IMG_W in this synthetic setup
    feat = features["0"]                             # layout: NCHW

    # ---- box branch ----
    pooled = jnp.concatenate(
        [roi_align(feat[i], proposals[i], BOX_POOL, SPATIAL_SCALE)
         for i in range(NUM_IMAGES)], axis=0)        # (total, C, 7, 7)
    box_feat_flat = pooled.reshape(pooled.shape[0], -1)
    proposals_cat = jnp.concatenate(proposals, axis=0)
    scores, pred_boxes = box_head_predict(box_feat_flat, proposals_cat,
                                          params["box"])

    results = []
    per_img_boxes = []
    per_img_labels = []
    for i in range(NUM_IMAGES):
        sl = slice(i * NUM_PROPOSALS, (i + 1) * NUM_PROPOSALS)
        b, s, l, v = postprocess_detections_one_image(pred_boxes[sl], scores[sl])
        # "valid" marks real detections (fixed-size DET_PER_IMG padding)
        results.append({"boxes": b, "labels": l, "scores": s, "valid": v})
        per_img_boxes.append(b)
        per_img_labels.append(l)

    # ---- mask branch ----
    mask_pooled = jnp.concatenate(
        [roi_align(feat[i], per_img_boxes[i], MASK_POOL, SPATIAL_SCALE)
         for i in range(NUM_IMAGES)], axis=0)        # (2*D, C, 14, 14)
    mask_feat_nhwc = jnp.transpose(mask_pooled, (0, 2, 3, 1))
    mask_logits = mask_head_predict(mask_feat_nhwc, params["mask"])

    labels_cat = jnp.concatenate(per_img_labels, axis=0)
    mask_prob = jax.nn.sigmoid(mask_logits)          # maskrcnn_inference
    idx = jnp.arange(mask_prob.shape[0])
    mask_sel = mask_prob[idx, labels_cat][:, None]   # (2D, 1, 28, 28)
    for i in range(NUM_IMAGES):
        results[i]["masks"] = mask_sel[i * DET_PER_IMG:(i + 1) * DET_PER_IMG]
    return results


# ======================================================================
# Deterministic synthetic parameters (shapes mirror the torch submodules)
# ======================================================================
def init_params(key):
    ks = jax.random.split(key, 8)
    s = 0.1
    box = {
        "w6": jax.random.normal(ks[0], (FLAT_BOX_FEAT, REPR_SIZE), jnp.float32) * s,
        "b6": jnp.zeros((1, REPR_SIZE), jnp.float32),
        "w7": jax.random.normal(ks[1], (REPR_SIZE, REPR_SIZE), jnp.float32) * s,
        "b7": jnp.zeros((1, REPR_SIZE), jnp.float32),
        "wcls": jax.random.normal(ks[2], (REPR_SIZE, NUM_CLASSES), jnp.float32) * s,
        "bcls": jnp.zeros((1, NUM_CLASSES), jnp.float32),
        "wbox": jax.random.normal(ks[3], (REPR_SIZE, 4 * NUM_CLASSES), jnp.float32) * (0.1 * s),
        "bbox": jnp.zeros((1, 4 * NUM_CLASSES), jnp.float32),
    }
    mask = {
        # conv3x3 weights flattened as (layer*9 + ky*3 + kx, Cin, Cout)
        "wc": jax.random.normal(ks[4], (NUM_MASK_LAYERS * 9, C_MASK, C_MASK), jnp.float32) * s,
        "bc": jnp.full((NUM_MASK_LAYERS, 1, C_MASK), 0.01, jnp.float32),
        # deconv 2x2 weights as (di*2 + dj, Cin, Cout)
        "wd": jax.random.normal(ks[5], (4, C_MASK, C_MASK), jnp.float32) * s,
        "bd": jnp.full((1, C_MASK), 0.01, jnp.float32),
        # 1x1 conv to class mask logits
        "wl": jax.random.normal(ks[6], (C_MASK, NUM_CLASSES), jnp.float32) * s,
        "bl": jnp.zeros((1, NUM_CLASSES), jnp.float32),
    }
    return {"box": box, "mask": mask}


if __name__ == "__main__":
    key = jax.random.PRNGKey(0)
    k_feat, k_prop, k_param = jax.random.split(key, 3)

    features = {"0": jax.random.normal(
        k_feat, (NUM_IMAGES, C_FEAT, FEAT_H, FEAT_W), jnp.float32)}

    kc, kw = jax.random.split(k_prop)
    ctr = jax.random.uniform(kc, (NUM_IMAGES, NUM_PROPOSALS, 2),
                             minval=8.0, maxval=24.0)
    wh = jax.random.uniform(kw, (NUM_IMAGES, NUM_PROPOSALS, 2),
                            minval=6.0, maxval=16.0)
    x1y1 = jnp.clip(ctr - wh / 2, 0.0, float(IMG_W))
    x2y2 = jnp.clip(ctr + wh / 2, 0.0, float(IMG_W))
    props = jnp.concatenate([x1y1, x2y2], axis=-1)
    proposals = [props[i] for i in range(NUM_IMAGES)]
    image_shapes = [(IMG_H, IMG_W)] * NUM_IMAGES

    params = init_params(k_param)
    results = roi_heads_forward(features, proposals, image_shapes, params)

    for r in results:
        for v in r.values():
            jax.block_until_ready(v)

    print("KERNEL_OK")
</pallas_src>

<mosaic_0001>
module attributes {stable_mosaic.version = 11 : i64} {
  func.func @_box_head_kernel(%arg0: i32, %arg1: memref<8x392xf32, #tpu.memory_space<vmem>>, %arg2: memref<8x4xf32, #tpu.memory_space<vmem>>, %arg3: memref<392x32xbf16, #tpu.memory_space<vmem>>, %arg4: memref<1x32xf32, #tpu.memory_space<vmem>>, %arg5: memref<32x32xbf16, #tpu.memory_space<vmem>>, %arg6: memref<1x32xf32, #tpu.memory_space<vmem>>, %arg7: memref<32x25xbf16, #tpu.memory_space<vmem>>, %arg8: memref<1x25xf32, #tpu.memory_space<vmem>>, %arg9: memref<8x128xf32, #tpu.memory_space<vmem>>) attributes {dimension_semantics = [#tpu.dimension_semantics<parallel>], iteration_bounds = array<i64: 2>, scalar_prefetch = 0 : i64, scratch_operands = 0 : i64, tpu.core_type = #tpu.core_type<tc>, window_params = [{transform_indices = @transform_0, window_bounds = array<i64: 8, 392>}, {transform_indices = @transform_1, window_bounds = array<i64: 8, 4>}, {pipeline_mode = #tpu.pipeline_mode<synchronous>, transform_indices = @transform_2, window_bounds = array<i64: 392, 32>}, {pipeline_mode = #tpu.pipeline_mode<synchronous>, transform_indices = @transform_3, window_bounds = array<i64: 1, 32>}, {pipeline_mode = #tpu.pipeline_mode<synchronous>, transform_indices = @transform_4, window_bounds = array<i64: 32, 32>}, {pipeline_mode = #tpu.pipeline_mode<synchronous>, transform_indices = @transform_5, window_bounds = array<i64: 1, 32>}, {pipeline_mode = #tpu.pipeline_mode<synchronous>, transform_indices = @transform_6, window_bounds = array<i64: 32, 25>}, {pipeline_mode = #tpu.pipeline_mode<synchronous>, transform_indices = @transform_7, window_bounds = array<i64: 1, 25>}, {transform_indices = @transform_8, window_bounds = array<i64: 8, 128>}]} {
    %c0 = arith.constant 0 : index
    %c0_0 = arith.constant 0 : index
    %0 = vector.load %arg1[%c0, %c0_0] : memref<8x392xf32, #tpu.memory_space<vmem>>, vector<8x392xf32>
    %1 = arith.truncf %0 : vector<8x392xf32> to vector<8x392xbf16>
    %c0_1 = arith.constant 0 : index
    %c0_2 = arith.constant 0 : index
    %2 = vector.load %arg3[%c0_1, %c0_2] : memref<392x32xbf16, #tpu.memory_space<vmem>>, vector<392x32xbf16>
    %cst = arith.constant dense<0.000000e+00> : vector<8x32xf32>
    %3 = tpu.matmul %1, %2, %cst {dimension_numbers = #tpu.dot_dimension_numbers<[1], [0], [0], [1], [0, 0, 1, 1], [], []>} : vector<8x392xbf16>, vector<392x32xbf16>, vector<8x32xf32> -> vector<8x32xf32>
    %c0_3 = arith.constant 0 : index
    %c0_4 = arith.constant 0 : index
    %4 = vector.load %arg4[%c0_3, %c0_4] : memref<1x32xf32, #tpu.memory_space<vmem>>, vector<1x32xf32>
    %5 = vector.broadcast %4 : vector<1x32xf32> to vector<8x32xf32>
    %6 = arith.addf %3, %5 : vector<8x32xf32>
    %cst_5 = arith.constant 0.000000e+00 : f32
    %7 = vector.broadcast %cst_5 : f32 to vector<8x32xf32>
    %8 = arith.maximumf %6, %7 : vector<8x32xf32>
    %9 = arith.truncf %8 : vector<8x32xf32> to vector<8x32xbf16>
    %c0_6 = arith.constant 0 : index
    %c0_7 = arith.constant 0 : index
    %10 = vector.load %arg5[%c0_6, %c0_7] : memref<32x32xbf16, #tpu.memory_space<vmem>>, vector<32x32xbf16>
    %cst_8 = arith.constant dense<0.000000e+00> : vector<8x32xf32>
    %11 = tpu.matmul %9, %10, %cst_8 {dimension_numbers = #tpu.dot_dimension_numbers<[1], [0], [0], [1], [0, 0, 1, 1], [], []>} : vector<8x32xbf16>, vector<32x32xbf16>, vector<8x32xf32> -> vector<8x32xf32>
    %c0_9 = arith.constant 0 : index
    %c0_10 = arith.constant 0 : index
    %12 = vector.load %arg6[%c0_9, %c0_10] : memref<1x32xf32, #tpu.memory_space<vmem>>, vector<1x32xf32>
    %13 = vector.broadcast %12 : vector<1x32xf32> to vector<8x32xf32>
    %14 = arith.addf %11, %13 : vector<8x32xf32>
    %cst_11 = arith.constant 0.000000e+00 : f32
    %15 = vector.broadcast %cst_11 : f32 to vector<8x32xf32>
    %16 = arith.maximumf %14, %15 : vector<8x32xf32>
    %17 = arith.truncf %16 : vector<8x32xf32> to vector<8x32xbf16>
    %c0_12 = arith.constant 0 : index
    %c0_13 = arith.constant 0 : index
    %18 = vector.load %arg7[%c0_12, %c0_13] : memref<32x25xbf16, #tpu.memory_space<vmem>>, vector<32x25xbf16>
    %cst_14 = arith.constant dense<0.000000e+00> : vector<8x25xf32>
    %19 = tpu.matmul %17, %18, %cst_14 {dimension_numbers = #tpu.dot_dimension_numbers<[1], [0], [0], [1], [0, 0, 1, 1], [], []>} : vector<8x32xbf16>, vector<32x25xbf16>, vector<8x25xf32> -> vector<8x25xf32>
    %c0_15 = arith.constant 0 : index
    %c0_16 = arith.constant 0 : index
    %20 = vector.load %arg8[%c0_15, %c0_16] : memref<1x25xf32, #tpu.memory_space<vmem>>, vector<1x25xf32>
    %21 = vector.broadcast %20 : vector<1x25xf32> to vector<8x25xf32>
    %22 = arith.addf %19, %21 : vector<8x25xf32>
    %23 = vector.extract_strided_slice %22 {offsets = [0, 0], sizes = [8, 5], strides = [1, 1]} : vector<8x25xf32> to vector<8x5xf32>
    %24 = vector.extract_strided_slice %22 {offsets = [0, 5], sizes = [8, 5], strides = [1, 1]} : vector<8x25xf32> to vector<8x5xf32>
    %25 = vector.extract_strided_slice %22 {offsets = [0, 10], sizes = [8, 5], strides = [1, 1]} : vector<8x25xf32> to vector<8x5xf32>
    %26 = vector.extract_strided_slice %22 {offsets = [0, 15], sizes = [8, 5], strides = [1, 1]} : vector<8x25xf32> to vector<8x5xf32>
    %27 = vector.extract_strided_slice %22 {offsets = [0, 20], sizes = [8, 5], strides = [1, 1]} : vector<8x25xf32> to vector<8x5xf32>
    %cst_17 = arith.constant dense<0xFF800000> : vector<8xf32>
    %28 = vector.multi_reduction <maximumf>, %23, %cst_17 [1] : vector<8x5xf32> to vector<8xf32>
    %29 = vector.shape_cast %28 : vector<8xf32> to vector<8x1xf32>
    %30 = vector.broadcast %29 : vector<8x1xf32> to vector<8x5xf32>
    %31 = arith.subf %23, %30 : vector<8x5xf32>
    %32 = math.exp %31 : vector<8x5xf32>
    %cst_18 = arith.constant dense<0.000000e+00> : vector<8xf32>
    %33 = vector.multi_reduction <add>, %32, %cst_18 [1] : vector<8x5xf32> to vector<8xf32>
    %34 = vector.shape_cast %33 : vector<8xf32> to vector<8x1xf32>
    %35 = vector.broadcast %34 : vector<8x1xf32> to vector<8x5xf32>
    %36 = arith.divf %32, %35 : vector<8x5xf32>
    %c0_19 = arith.constant 0 : index
    %c0_20 = arith.constant 0 : index
    %37 = vector.load %arg2[%c0_19, %c0_20] : memref<8x4xf32, #tpu.memory_space<vmem>>, vector<8x4xf32>
    %38 = vector.extract_strided_slice %37 {offsets = [0, 2], sizes = [8, 1], strides = [1, 1]} : vector<8x4xf32> to vector<8x1xf32>
    %39 = vector.extract_strided_slice %37 {offsets = [0, 0], sizes = [8, 1], strides = [1, 1]} : vector<8x4xf32> to vector<8x1xf32>
    %40 = arith.subf %38, %39 : vector<8x1xf32>
    %41 = vector.extract_strided_slice %37 {offsets = [0, 3], sizes = [8, 1], strides = [1, 1]} : vector<8x4xf32> to vector<8x1xf32>
    %42 = vector.extract_strided_slice %37 {offsets = [0, 1], sizes = [8, 1], strides = [1, 1]} : vector<8x4xf32> to vector<8x1xf32>
    %43 = arith.subf %41, %42 : vector<8x1xf32>
    %44 = vector.extract_strided_slice %37 {offsets = [0, 0], sizes = [8, 1], strides = [1, 1]} : vector<8x4xf32> to vector<8x1xf32>
    %cst_21 = arith.constant 5.000000e-01 : f32
    %45 = vector.broadcast %cst_21 : f32 to vector<8x1xf32>
    %46 = arith.mulf %45, %40 : vector<8x1xf32>
    %47 = arith.addf %44, %46 : vector<8x1xf32>
    %48 = vector.extract_strided_slice %37 {offsets = [0, 1], sizes = [8, 1], strides = [1, 1]} : vector<8x4xf32> to vector<8x1xf32>
    %cst_22 = arith.constant 5.000000e-01 : f32
    %49 = vector.broadcast %cst_22 : f32 to vector<8x1xf32>
    %50 = arith.mulf %49, %43 : vector<8x1xf32>
    %51 = arith.addf %48, %50 : vector<8x1xf32>
    %52 = vector.broadcast %40 : vector<8x1xf32> to vector<8x5xf32>
    %53 = arith.mulf %24, %52 : vector<8x5xf32>
    %54 = vector.broadcast %47 : vector<8x1xf32> to vector<8x5xf32>
    %55 = arith.addf %53, %54 : vector<8x5xf32>
    %56 = vector.broadcast %43 : vector<8x1xf32> to vector<8x5xf32>
    %57 = arith.mulf %25, %56 : vector<8x5xf32>
    %58 = vector.broadcast %51 : vector<8x1xf32> to vector<8x5xf32>
    %59 = arith.addf %57, %58 : vector<8x5xf32>
    %cst_23 = arith.constant 4.13516665 : f32
    %60 = vector.broadcast %cst_23 : f32 to vector<8x5xf32>
    %61 = arith.minimumf %26, %60 : vector<8x5xf32>
    %62 = math.exp %61 : vector<8x5xf32>
    %63 = vector.broadcast %40 : vector<8x1xf32> to vector<8x5xf32>
    %64 = arith.mulf %62, %63 : vector<8x5xf32>
    %cst_24 = arith.constant 4.13516665 : f32
    %65 = vector.broadcast %cst_24 : f32 to vector<8x5xf32>
    %66 = arith.minimumf %27, %65 : vector<8x5xf32>
    %67 = math.exp %66 : vector<8x5xf32>
    %68 = vector.broadcast %43 : vector<8x1xf32> to vector<8x5xf32>
    %69 = arith.mulf %67, %68 : vector<8x5xf32>
    %cst_25 = arith.constant 5.000000e-01 : f32
    %70 = vector.broadcast %cst_25 : f32 to vector<8x5xf32>
    %71 = arith.mulf %70, %64 : vector<8x5xf32>
    %72 = arith.subf %55, %71 : vector<8x5xf32>
    %cst_26 = arith.constant 0.000000e+00 : f32
    %cst_27 = arith.constant 3.200000e+01 : f32
    %73 = vector.broadcast %cst_26 : f32 to vector<8x5xf32>
    %74 = arith.maximumf %73, %72 : vector<8x5xf32>
    %75 = vector.broadcast %cst_27 : f32 to vector<8x5xf32>
    %76 = arith.minimumf %75, %74 : vector<8x5xf32>
    %cst_28 = arith.constant 5.000000e-01 : f32
    %77 = vector.broadcast %cst_28 : f32 to vector<8x5xf32>
    %78 = arith.mulf %77, %69 : vector<8x5xf32>
    %79 = arith.subf %59, %78 : vector<8x5xf32>
    %cst_29 = arith.constant 0.000000e+00 : f32
    %cst_30 = arith.constant 3.200000e+01 : f32
    %80 = vector.broadcast %cst_29 : f32 to vector<8x5xf32>
    %81 = arith.maximumf %80, %79 : vector<8x5xf32>
    %82 = vector.broadcast %cst_30 : f32 to vector<8x5xf32>
    %83 = arith.minimumf %82, %81 : vector<8x5xf32>
    %cst_31 = arith.constant 5.000000e-01 : f32
    %84 = vector.broadcast %cst_31 : f32 to vector<8x5xf32>
    %85 = arith.mulf %84, %64 : vector<8x5xf32>
    %86 = arith.addf %55, %85 : vector<8x5xf32>
    %cst_32 = arith.constant 0.000000e+00 : f32
    %cst_33 = arith.constant 3.200000e+01 : f32
    %87 = vector.broadcast %cst_32 : f32 to vector<8x5xf32>
    %88 = arith.maximumf %87, %86 : vector<8x5xf32>
    %89 = vector.broadcast %cst_33 : f32 to vector<8x5xf32>
    %90 = arith.minimumf %89, %88 : vector<8x5xf32>
    %cst_34 = arith.constant 5.000000e-01 : f32
    %91 = vector.broadcast %cst_34 : f32 to vector<8x5xf32>
    %92 = arith.mulf %91, %69 : vector<8x5xf32>
    %93 = arith.addf %59, %92 : vector<8x5xf32>
    %cst_35 = arith.constant 0.000000e+00 : f32
    %cst_36 = arith.constant 3.200000e+01 : f32
    %94 = vector.broadcast %cst_35 : f32 to vector<8x5xf32>
    %95 = arith.maximumf %94, %93 : vector<8x5xf32>
    %96 = vector.broadcast %cst_36 : f32 to vector<8x5xf32>
    %97 = arith.minimumf %96, %95 : vector<8x5xf32>
    %cst_37 = arith.constant 0.000000e+00 : f32
    %98 = vector.broadcast %cst_37 : f32 to vector<8x103xf32>
    %99 = tpu.concatenate %36, %76, %83, %90, %97, %98 in 1 : vector<8x5xf32>, vector<8x5xf32>, vector<8x5xf32>, vector<8x5xf32>, vector<8x5xf32>, vector<8x103xf32> -> vector<8x128xf32>
    %c0_38 = arith.constant 0 : index
    %c0_39 = arith.constant 0 : index
    %100 = vector.load %arg9[%c0_38, %c0_39] : memref<8x128xf32, #tpu.memory_space<vmem>>, vector<8x128xf32>
    tpu.vector_store %arg9[%c0_38, %c0_39], %99 {strides = array<i32>} : memref<8x128xf32, #tpu.memory_space<vmem>>, vector<8x128xf32>,
    return
  }
  func.func @transform_0(%arg0: i32) -> (i32, i32) {
    %c0_i32 = arith.constant 0 : i32
    %c0_i32_0 = arith.constant 0 : i32
    return %arg0, %c0_i32 : i32, i32
  }
  func.func @transform_1(%arg0: i32) -> (i32, i32) {
    %c0_i32 = arith.constant 0 : i32
    %c0_i32_0 = arith.constant 0 : i32
    return %arg0, %c0_i32 : i32, i32
  }
  func.func @transform_2(%arg0: i32) -> (i32, i32) {
    %c0_i32 = arith.constant 0 : i32
    %c0_i32_0 = arith.constant 0 : i32
    %c0_i32_1 = arith.constant 0 : i32
    return %c0_i32, %c0_i32_0 : i32, i32
  }
  func.func @transform_3(%arg0: i32) -> (i32, i32) {
    %c0_i32 = arith.constant 0 : i32
    %c0_i32_0 = arith.constant 0 : i32
    %c0_i32_1 = arith.constant 0 : i32
    return %c0_i32, %c0_i32_0 : i32, i32
  }
  func.func @transform_4(%arg0: i32) -> (i32, i32) {
    %c0_i32 = arith.constant 0 : i32
    %c0_i32_0 = arith.constant 0 : i32
    %c0_i32_1 = arith.constant 0 : i32
    return %c0_i32, %c0_i32_0 : i32, i32
  }
  func.func @transform_5(%arg0: i32) -> (i32, i32) {
    %c0_i32 = arith.constant 0 : i32
    %c0_i32_0 = arith.constant 0 : i32
    %c0_i32_1 = arith.constant 0 : i32
    return %c0_i32, %c0_i32_0 : i32, i32
  }
  func.func @transform_6(%arg0: i32) -> (i32, i32) {
    %c0_i32 = arith.constant 0 : i32
    %c0_i32_0 = arith.constant 0 : i32
    %c0_i32_1 = arith.constant 0 : i32
    return %c0_i32, %c0_i32_0 : i32, i32
  }
  func.func @transform_7(%arg0: i32) -> (i32, i32) {
    %c0_i32 = arith.constant 0 : i32
    %c0_i32_0 = arith.constant 0 : i32
    %c0_i32_1 = arith.constant 0 : i32
    return %c0_i32, %c0_i32_0 : i32, i32
  }
  func.func @transform_8(%arg0: i32) -> (i32, i32) {
    %c0_i32 = arith.constant 0 : i32
    %c0_i32_0 = arith.constant 0 : i32
    return %arg0, %c0_i32 : i32, i32
  }
}

</mosaic_0001>

<bundles_post_ra>
// kernel: tpu_custom_call.1
= control target key start
LH: loop header
LB: loop body
LE: loop exit
PB: predicated region body
PF: predicated region fallthrough
CT: control target
= control target key end

     0   :  { %13 = vsyncpa [#allocation3], 0  ;;  %s1395_s0 = inlined_call_operand.vmem [shape: f32[16,392], index: 0, kind: input, shape index: {}]   ;;  %s1396_s1 = inlined_call_operand.vmem [shape: f32[16,4], index: 1, kind: input, shape index: {}]   ;;  %s1397_s2 = inlined_call_operand.vmem [shape: bf16[392,32], index: 2, kind: input, shape index: {}]   ;;  %s1398_s3 = inlined_call_operand.vmem [shape: f32[1,32], index: 3, kind: input, shape index: {}]   ;;  %s1399_s4 = inlined_call_operand.vmem [shape: bf16[32,32], index: 4, kind: input, shape index: {}]   ;;  %s1400_s5 = inlined_call_operand.vmem [shape: f32[1,32], index: 5, kind: input, shape index: {}]   ;;  %s1401_s6 = inlined_call_operand.vmem [shape: bf16[32,25], index: 6, kind: input, shape index: {}]   ;;  %s1402_s7 = inlined_call_operand.vmem [shape: f32[1,25], index: 7, kind: input, shape index: {}]   ;;  %s1403_s8 = inlined_call_operand.hbm [shape: f32[16,128], index: 8, kind: output, shape index: {}]  }
   0x1   :  { %15 = vsyncpa [#allocation3 + $0x1], 0  ;;  %s1191_s27 = smov 0   ;;  %s1193_s28 = smov 0  }
   0x2   :  { %s1195_s29 = smov 0   ;;  %s1197_s30 = smov 0  }
   0x3 LB: > { %s1212_s9 = sadd.s32 4294967295, %s1136_s30   ;;  %s858_s10 = sadd.s32 4294967294, %s1136_s30   ;;  %s1136_s30 = sphi %s1197_s30, %s1409_s30   ;;  %s1132_s29 = sphi %s1195_s29, %s1408_s29   ;;  %s1128_s28 = sphi %s1193_s28, %s1407_s28   ;;  %s1124_s27 = sphi %s1191_s27, %s1406_s27  }
   0x4   : > { %s1216_s11 = sadd.s32 1, %s1136_s30   ;;  %s206_s12 = sadd.s32 1, %s1132_s29 }
   0x5   : > { %s203_s13 = ssub.s32 %s1136_s30, %s1216_s11  ;;  %p216_p0 = scmp.ne.s32.totalorder %s1132_s29, %s1128_s28 }
   0x6   : > { %p204_p1 = scmp.eq.s32.totalorder %s203_s13, 0  ;;  %p217_p2 = scmp.eq.s32.totalorder %s1212_s9, 1 }
   0x7   : > { %p222_p3 = scmp.ne.s32.totalorder %s1128_s28, %s1124_s27  ;;  %p223_p4 = scmp.eq.s32.totalorder %s858_s10, 1 }
   0x8   : > { %s1227_s14 = scalar_select %p204_p1, %s1132_s29, %s206_s12  }
   0x9   : > { %p1229_p5 = por %p217_p2, %p216_p0  ;;  %p1233_p6 = por %p223_p4, %p222_p3 }
   0xa   : > { %p861_p7 = scmp.ge.s32.totalorder %s1136_s30, 1  ;;  %p274_p8 = scmp.lt.s32.totalorder %s1136_s30, 3 }
   0xc   : > { %p275_p9 = pnand %p861_p7, %p274_p8 }
   0xd   : > { %p312_p10 = scmp.lt.s32.totalorder (!%p275_p9), %s1212_s9, 1  ;;  %s1138_s13 = smov (!%p275_p9), 2  }
   0xe   : > { %278 = sbr.rel (%p275_p9) target bundleno = 737 (0x2e1), region = 52  ;;  %s1139_s24 = smov (!%p275_p9), 126  }
   0xf   : > { %s1145_s19 = smov (!%p275_p9), 10   ;;  %s309_s20 = sand.u32 (!%p275_p9), 1, %s1128_s28  }
  0x10   : > { %s862_s22 = sshll.u32 (!%p275_p9), %s309_s20, 3  ;;  %s772_s12 = scalar_lea.sflag (!%p275_p9), [#allocation3], %s309_s20 }
  0x13   : > { %v993_v0 = vld [vmem:[%s1397_s2 + $0x38] sm:$0xff]  ;;  %v992_v3 = vld [vmem:[%s1397_s2 + $0x30] sm:$0xff]  ;;  %s313_s10 = scalar_select %p312_p10, %s1212_s9, 1  ;;  %v991_v6 = vld [vmem:[%s1397_s2 + $0x28] sm:$0xff]  ;;  %vm534_vm0 = vcmask 1043456   ;;  %vm530_vm1 = vcmask 64512  }
  0x14   : > { %v1001_v1 = vld [vmem:[%s1397_s2 + $0x78] sm:$0xff]  ;;  %538 = vmatpush.bf16.msra.mxu0 %v993_v0  ;;  %v1000_v4 = vld [vmem:[%s1397_s2 + $0x70] sm:$0xff]  ;;  %v999_v7 = vld [vmem:[%s1397_s2 + $0x68] sm:$0xff]  ;;  %vm612_vm2 = vcmask 261120   ;;  %v1140_v60 = vmov 2   ;;  %v1141_v62 = vmov 1  }
  0x15   : > { %v1009_v2 = vld [vmem:[%s1397_s2 + $0xb8] sm:$0xff]  ;;  %551 = vmatpush.bf16.msra.mxu1 %v1001_v1  ;;  %v1008_v5 = vld [vmem:[%s1397_s2 + $0xb0] sm:$0xff]  ;;  %s985_s17 = sshll.u32 %s313_s10, 5  ;;  %s865_s18 = sshll.u32 %s313_s10, 3  ;;  %v378_v8 = vld [vmem:[%s1397_s2 + $0xc0] sm:$0xf]  ;;  %1061 = vset.pattern.permute.xlu1 %v1140_v60 }
  0x16   : > { %564 = vmatpush.bf16.msra.mxu2 %v1009_v2  ;;  %s1262_s21 = scalar_lea.vmem %s1395_s0, %s985_s17  ;;  %s320_s17 = scalar_lea.vmem %s1396_s1, %s865_s18  ;;  %v1007_v9 = vld [vmem:[%s1397_s2 + $0xa8] sm:$0xff]  ;;  %v480_v10 = vunpack.c.l.b16 %v378_v8  ;;  %v990_v12 = vld [vmem:[%s1397_s2 + $0x20] sm:$0xff]  ;;  %v989_v20 = vld [vmem:[%s1397_s2 + $0x18] sm:$0xff]  ;;  %1064 = vset.pattern.permute.xlu0 %v1141_v62  ;;  %v1142_v63 = vmov 3   ;;  %vm667_vm3 = vcmask 39936   ;;  %vm762_vm8 = vcmask 80896  }
  0x17   : > { %v325_v11 = vld [vmem:[%s1262_s21 + $0x18] sm:$0xff]  ;;  %v1283_v14 = vld [vmem:[%s320_s17] sm:$0xff]  ;;  %v1011_v16 = vld [vmem:[%s1399_s4 + $0x8] sm:$0xff]  ;;  %s1144_s17 = smov 118   ;;  %vm764_vm9 = vcmask 121856   ;;  %vm766_vm10 = vcmask 162816  }
  0x18   : > { %539 = vmatpush.bf16.msra.mxu0 %v992_v3  ;;  %v505_v13 = vpack.c.b16 %v480_v10, %v480_v10  ;;  %v998_v15 = vld [vmem:[%s1397_s2 + $0x60] sm:$0xff]  ;;  %v329_v19 = vpack.c.bf16 %v325_v11, %v325_v11  ;;  %694 = vrot.lane.b32.xlu0 %v1283_v14, %s1138_s13  ;;  %v997_v21 = vld [vmem:[%s1397_s2 + $0x58] sm:$0xff]  ;;  %v988_v23 = vld [vmem:[%s1397_s2 + $0x10] sm:$0xff]  ;;  %vm768_vm11 = vcmask 203776  }
  0x19   : > { %552 = vmatpush.bf16.msra.mxu1 %v1000_v4  ;;  %v1006_v17 = vld [vmem:[%s1397_s2 + $0xa0] sm:$0xff]  ;;  %v1005_v22 = vld [vmem:[%s1397_s2 + $0x98] sm:$0xff]  ;;  %v996_v24 = vld [vmem:[%s1397_s2 + $0x50] sm:$0xff] }
  0x1a   : > { %565 = vmatpush.bf16.msra.mxu2 %v1008_v5  ;;  %v536_v18 = vsel %vm534_vm0, %v505_v13, 0  ;;  %v1004_v25 = vld [vmem:[%s1397_s2 + $0x90] sm:$0xff]  ;;  %v987_v26 = vld [vmem:[%s1397_s2 + $0x8] sm:$0xff]  ;;  %v986_v29 = vld [vmem:[%s1397_s2] sm:$0xff] }
  0x1b   : > { %584 = vmatpush.bf16.msra.mxu3 %v536_v18  ;;  %v995_v27 = vld [vmem:[%s1397_s2 + $0x48] sm:$0xff]  ;;  %v994_v30 = vld [vmem:[%s1397_s2 + $0x40] sm:$0xff]  ;;  %v324_v34 = vld [vmem:[%s1262_s21 + $0x10] sm:$0xff] }
  0x1c   : > { %540 = vmatpush.bf16.msra.mxu0 %v991_v6  ;;  %v1003_v28 = vld [vmem:[%s1397_s2 + $0x88] sm:$0xff]  ;;  %v322_v31 = vld [vmem:[%s1262_s21] sm:$0xff]  ;;  %v328_v37 = vpack.c.bf16 %v324_v34, %v324_v34  ;;  %v1143_v6 = vmov 0  }
  0x1d   : > { %553 = vmatpush.bf16.msra.mxu1 %v999_v7  ;;  %v323_v32 = vld [vmem:[%s1262_s21 + $0x8] sm:$0xff]  ;;  %v1002_v33 = vld [vmem:[%s1397_s2 + $0x80] sm:$0xff]  ;;  %v326_v35 = vpack.c.bf16 %v322_v31, %v322_v31  ;;  %1063 = vset.pattern.permute.xlu2 %v1143_v6  ;;  %s982_s21 = sshll.u32 %s1212_s9, 3  ;;  %s311_s9 = scalar_lea.vmem [#allocation2], %s862_s22 }
  0x1e   : > { %566 = vmatpush.bf16.msra.mxu2 %v1007_v9  ;;  %962 = vmatmul.msk.bf16.vlgmr.msra.gmra.mxu3 %vm530_vm1, %v329_v19  ;;  %v327_v36 = vpack.c.bf16 %v323_v32, %v323_v32  ;;  %v1010_v38 = vld [vmem:[%s1399_s4] sm:$0xff]  ;;  %v1013_v40 = vld [vmem:[%s1401_s6 + $0x8] sm:$0xff]  ;;  %s782_s25 = scalar_lea.hbm %s1403_s8, %s982_s21  ;;  %s784_s18 = sshll.u32 %s311_s9, 4  ;;  %s785_s18 = int_to_ptr.vmem [resolvable:$true] %s784_s18 }
  0x1f   : > { %622 = vmatpush.bf16.msrb.mxu3 %v1011_v16  ;;  %v1012_v42 = vld [vmem:[%s1401_s6] sm:$0xff]  ;;  %s786_s26 = sshll.u32 %s782_s25, 4  ;;  %s1094_s22 = scalar_lea.hbm %s1403_s8, 16  ;;  %s787_s26 = int_to_ptr.hbm [resolvable:$true] %s786_s26 }
  0x20   : > { %541 = vmatpush.bf16.msra.mxu0 %v990_v12  ;;  %v1065_v46 = vld [vmem:[%s1398_s3] ss:$0 sm:$0xff]  ;;  %s1088_s10 = sshra.s32 %s787_s26, 4  ;;  %s1089_s10 = int_to_ptr.hbm [resolvable:$true] %s1088_s10 }
  0x21   : > { %554 = vmatpush.bf16.msra.mxu1 %v998_v15  ;;  %v1066_v0 = vld [vmem:[%s1400_s5] ss:$0 sm:$0xff]  ;;  %s1090_s13 = scalar_lea.hbm %s1089_s10, 8  ;;  %p1095_p0 = scmp.lt.s32.totalorder %s1089_s10, %s1403_s8 }
  0x22   : > { %567 = vmatpush.bf16.msra.mxu2 %v1006_v17  ;;  %v1067_v7 = vld [vmem:[%s1402_s7] ss:$0 sm:$0xff]  ;;  %p1091_p11 = scmp.ne.s32.totalorder %s1089_s10, %s1090_s13  ;;  %p1096_p1 = scmp.lt.s32.totalorder %s1094_s22, %s1090_s13 }
  0x23   : > { %623 = vmatpush.bf16.msrb.mxu3 %v1010_v38 }
  0x24   : > { %542 = vmatpush.bf16.msra.mxu0 %v989_v20  ;;  %p1092_p12 = pnand %p1091_p11, %p1229_p5  ;;  %p1097_p2 = por %p1096_p1, %p1095_p0 }
  0x25   : > { %555 = vmatpush.bf16.msra.mxu1 %v997_v21 }
  0x26   : > { %568 = vmatpush.bf16.msra.mxu2 %v1005_v22  ;;  %p1093_p13 = pneg %p1092_p12 }
  0x27   : > { %660 = vmatpush.bf16.msra.mxu3 %v1013_v40 }
  0x28   : > { %543 = vmatpush.bf16.msra.mxu0 %v988_v23  ;;  %p1098_p3 = pnand %p1097_p2, %p1093_p13 }
  0x29   : > { %556 = vmatpush.bf16.msra.mxu1 %v996_v24 }
  0x2a   : > { %569 = vmatpush.bf16.msra.mxu2 %v1004_v25 }
  0x2b   : > { %661 = vmatpush.bf16.msra.mxu3 %v1012_v42 }
  0x2c   : > { %544 = vmatpush.bf16.msra.mxu0 %v987_v26 }
  0x2d   : > { %557 = vmatpush.bf16.msra.mxu1 %v995_v27 }
  0x2e   : > { %570 = vmatpush.bf16.msra.mxu2 %v1003_v28 }
  0x30   : > { %545 = vmatpush.bf16.msra.mxu0 %v986_v29 }
  0x31   : > { %558 = vmatpush.bf16.msra.mxu1 %v994_v30 }
  0x32   : > { %571 = vmatpush.bf16.msra.mxu2 %v1002_v33 }
  0x33   : > { %546 = vmatmul.bf16.vlgmr.msra.gmra.mxu0 %v326_v35 }
  0x34   : > { %559 = vmatmul.bf16.vlgmr.msra.gmra.mxu1 %v327_v36 }
  0x35   : > { %572 = vmatmul.bf16.vlgmr.msra.gmra.mxu2 %v328_v37 }
  0x8a   : > { %v695_v39 = vpop.permute.xlu0 %694 }
  0x8b   : > { %v697_v41 = vsub.f32 %v1283_v14, %v695_v39 }
  0x8d   : > { %v698_v43 = vmul.f32 0.5, %v697_v41  ;;  %706 = vperm.xlu1 %1061, %v697_v41  }
  0x8f   : > { %700 = vrot.lane.b32.xlu0 %v698_v43, %s1139_s24 }
  0x95   : > { %1062 = vset.pattern.permute.xlu1 %v1142_v63 }
  0x96   : > { %717 = vperm.xlu1 %1062, %v697_v41  }
  0xa1   : > { %v586_v44 = vpop.f32.mrf.mxu3 }
  0xa9   : > { %v588_v45 = vpop.f32.mrf.mxu3 }
  0xb0   : > { %v547_v47 = vpop.f32.mrf.mxu0 }
  0xb1   : > { %v560_v48 = vpop.f32.mrf.mxu1  ;;  %v548_v49 = vadd.f32 %v1065_v46, %v547_v47 }
  0xb3   : > { %v561_v50 = vadd.f32 %v560_v48, %v548_v49 }
  0xb8   : > { %v573_v51 = vpop.f32.mrf.mxu2  ;;  %v549_v53 = vpop.f32.mrf.mxu0 }
  0xb9   : > { %v574_v52 = vadd.f32 %v573_v51, %v561_v50  ;;  %v562_v54 = vpop.f32.mrf.mxu1 }
  0xbb   : > { %v587_v55 = vadd.f32 %v586_v44, %v574_v52 }
  0xbd   : > { %v590_v56 = vmax.f32 %v587_v55, 0.0 }
  0xbf   : > { %v591_v57 = vpack.c.bf16 %v590_v56, %v590_v56 }
  0xc0   : > { %v575_v58 = vpop.f32.mrf.mxu2 }
  0xc1   : > { %971 = vmatmul.msk.bf16.vlgmr.msrb.gmra.mxu3 %vm612_vm2, %v591_v57 }
 0x101   : > { %v701_v59 = vpop.permute.xlu0 %700 }
 0x102   : > { %v703_v61 = vadd.f32 %v701_v59, %v1283_v14  ;;  %v707_v14 = vpop.permute.xlu1 %706 }
 0x104   : > { %722 = vperm.xlu0 %1064, %v703_v61  }
 0x10a   : > { %v718_v18 = vpop.permute.xlu1 %717 }
 0x144   : > { %v625_v1 = vpop.f32.mrf.mxu3 }
 0x145   : > { %v626_v2 = vadd.f32 %v1066_v0, %v625_v1 }
 0x147   : > { %v629_v3 = vmax.f32 %v626_v2, 0.0 }
 0x149   : > { %v630_v4 = vpack.c.bf16 %v629_v3, %v629_v3 }
 0x14b   : > { %980 = vmatmul.msk.bf16.vlgmr.msra.gmra.mxu3 %vm612_vm2, %v630_v4 }
 0x14c   : > { %v627_v5 = vpop.f32.mrf.mxu3 }
 0x176   : > { %v723_v34 = vpop.permute.xlu0 %722 }
 0x1ce   : > { %v663_v8 = vpop.f32.mrf.mxu3 }
 0x1cf   : > { %v664_v9 = vadd.f32 %v1067_v7, %v663_v8 }
 0x1d1   : > { %v726_v10 = vmin.f32 %v664_v9, 4.1351666  ;;  %v668_v11 = vsel %vm667_vm3, %v664_v9, -inf  ;;  %v709_v25 = vmul.f32 %v707_v14, %v664_v9  ;;  %v720_v32 = vmul.f32 %v718_v18, %v664_v9 }
 0x1d2   : > { %669 = vmax.xlane.f32.xlu2 %v668_v11 }
 0x1d3   : > { %v727_v12 = vmul.f32 1.442695, %v726_v10  ;;  %v725_v36 = vadd.f32 %v723_v34, %v720_v32 }
 0x1d5   : > { %1068 = vpow2.f32 %v727_v12 }
 0x1d6   : > { %v665_v13 = vpop.f32.mrf.mxu3 }
 0x1db   : > { %v1069_v15 = vpop.eup %1068 }
 0x1dc   : > { %v729_v16 = vmul.f32 %v1069_v15, %v707_v14  ;;  %v730_v19 = vmul.f32 %v1069_v15, %v718_v18 }
 0x1de   : > { %v731_v17 = vmul.f32 0.5, %v729_v16  ;;  %v739_v20 = vmul.f32 0.5, %v730_v19 }
 0x1e0   : > { %733 = vrot.lane.b32.xlu1 %v731_v17, %s1144_s17 }
 0x1e8   : > { %741 = vrot.lane.b32.xlu1 %v739_v20, %s1144_s17 }
 0x1ea   : > { %712 = vperm.xlu2 %1063, %v703_v61  }
 0x245   : > { %v670_v21 = vpop.xlane.xlu2 %669 }
 0x246   : > { %v671_v22 = vsub.f32 %v664_v9, %v670_v21 }
 0x248   : > { %v672_v23 = vmul.f32 1.442695, %v671_v22 }
 0x24a   : > { %1070 = vpow2.f32 %v672_v23 }
 0x24d   : > { %v713_v24 = vpop.permute.xlu2 %712 }
 0x24e   : > { %v715_v27 = vadd.f32 %v713_v24, %v709_v25 }
 0x250   : > { %v1071_v26 = vpop.eup %1070 }
 0x251   : > { %v674_v28 = vsel %vm667_vm3, %v1071_v26, 0.0 }
 0x252   : > { %v734_v29 = vpop.permute.xlu1 %733  ;;  %675 = vadd.xlane.f32.xlu0 %v674_v28 }
 0x253   : > { %v736_v30 = vsub.f32 %v715_v27, %v734_v29  ;;  %v747_v31 = vadd.f32 %v734_v29, %v715_v27 }
 0x255   : > { %v748_v33 = vmax.f32 %v747_v31, 0.0  ;;  %v737_v49 = vmax.f32 %v736_v30, 0.0 }
 0x257   : > { %v749_v35 = vmin.f32 %v748_v33, 32.0  ;;  %v738_v55 = vmin.f32 %v737_v49, 32.0 }
 0x259   : > { %754 = vrot.lane.b32.xlu1 %v749_v35, %s1145_s19 }
 0x25a   : > { %v742_v37 = vpop.permute.xlu1 %741 }
 0x25b   : > { %v750_v38 = vadd.f32 %v742_v37, %v725_v36  ;;  %v744_v45 = vsub.f32 %v725_v36, %v742_v37 }
 0x25d   : > { %v751_v39 = vmax.f32 %v750_v38, 0.0  ;;  %v745_v51 = vmax.f32 %v744_v45, 0.0 }
 0x25f   : > { %v752_v40 = vmin.f32 %v751_v39, 32.0  ;;  %v746_v57 = vmin.f32 %v745_v51, 32.0 }
 0x261   : > { %758 = vrot.lane.b32.xlu2 %v752_v40, %s1145_s19 }
 0x2bb   : > { %v759_v61 = vpop.permute.xlu2 %758 }
 0x2c5   : > { %v676_v41 = vpop.xlane.xlu0 %675 }
 0x2c6   : > { %1072 = vrcp.f32 %v676_v41  ;;  %v688_v46 = vand.u32 2147483648, %v676_v41  ;;  %v686_v48 = vand.u32 2147483647, %v676_v41  ;;  %vm682_vm5 = vweird.f32 %v676_v41 }
 0x2c8   : > { %v689_v52 = vor.u32 1.1754944e-38, %v688_v46  ;;  %vm687_vm7 = vcmp.eq.f32.partialorder %v686_v48, 8.507059e+37 }
 0x2cb   : > { %v755_v59 = vpop.permute.xlu1 %754 }
 0x2cc   : > { %v1073_v42 = vpop.eup %1072 }
 0x2cd   : > { %v678_v43 = vmul.f32 %v1073_v42, %v676_v41  ;;  %vm683_vm4 = vweird.f32 %v1073_v42 }
 0x2ce   : > { %vm684_vm6 = vmor %vm682_vm5, %vm683_vm4 }
 0x2cf   : > { %v679_v44 = vsub.f32 1.0, %v678_v43 }
 0x2d1   : > { %v680_v47 = vmul.f32 %v1073_v42, %v679_v44 }
 0x2d3   : > { %v681_v50 = vadd.f32 %v1073_v42, %v680_v47 }
 0x2d5   : > { %v685_v53 = vsel %vm684_vm6, %v1073_v42, %v681_v50 }
 0x2d6   : > { %v690_v54 = vsel %vm687_vm7, %v689_v52, %v685_v53 }
 0x2d7   : > { %v691_v56 = vmul.f32 %v1071_v26, %v690_v54 }
 0x2d9   : > { %v761_v58 = vsel %vm667_vm3, %v691_v56, %v738_v55 }
 0x2da   : > { %v763_v60 = vsel %vm762_vm8, %v761_v58, %v746_v57 }
 0x2db   : > { %v765_v62 = vsel %vm764_vm9, %v763_v60, %v755_v59 }
 0x2dc   : > { %v767_v63 = vsel %vm766_vm10, %v765_v62, %v759_v61 }
 0x2dd   : > { %v769_v0 = vsel %vm768_vm11, %v767_v63, 0.0 }
 0x2de   : > { %770 = vst [vmem:[%s311_s9] sm:$0xff] %v769_v0 }
 0x2df   : > { %1101 = shalt.err (!%p1098_p3)
}
 0x2e0   : > { %1014 = dma.vmem_to_hbm [thread:$0]  (%p1229_p5), %s785_s18, 128, %s787_s26, %s772_s12  }
 0x2e1 PF: > { %p1020_p4 = scmp.ge.s32.totalorder %s1136_s30, 2  ;;  %s798_s20 = sand.u32 1, %s1124_s27  }
 0x2e2   : > { %s799_s24 = scalar_lea.sflag [#allocation3], %s798_s20 }
 0x2e3   : > { %p1017_p7 = pnand %p1020_p4, %p1233_p6 }
 0x2e5   : > { %p1018_p8 = pneg %p1017_p7 }
 0x2e7   : > { %1119 = dma.done.wait (%p1018_p8), %s799_s24, 128  }
 0x2e8   : > { %1121 = vsyncadd (%p1018_p8), %s799_s24, 4294967168  ;;  %p18_p9 = scmp.ge.s32.totalorder %s1216_s11, 4   ;;  %s1406_s27 = smov %s1128_s28 }
 0x2e9   : > { %s1407_s28 = smov %s1132_s29  ;;  %s1408_s29 = smov %s1227_s14 }
 0x2ea   : > { %s1409_s30 = smov %s1216_s11  ;;  %20 = sbr.rel (!%p18_p9) target bundleno = 3 (0x3), region = 90 }
 0x2ef   :  { %805 = vsyncpa [#allocation3], 1 }
 0x2f0   :  { %807 = vsyncpa [#allocation3 + $0x1], 1 }

</bundles_post_ra>
